<compile_context>
chip_gen: v5e
topology: v5e:2x2
jax: 0.10.0
libtpu: 0.0.40
codegen_flags: <defaults>
</compile_context>

<pallas_src>
import functools

import jax
import jax.numpy as jnp
from jax.experimental import pallas as pl
from jax.experimental.pallas import tpu as pltpu

# ---------------------------------------------------------------------------
# Model dimensions (module defaults are input=2048, hidden=128, out=2; we use
# a small input_size=256 example, hidden/out kept at the module defaults).
# ---------------------------------------------------------------------------
BATCH = 8
INPUT_SIZE = 256
HIDDEN_SIZE = 128
OUTPUT_SIZE = 2
OUT_PAD = 128          # fc6 output padded to a full lane width inside the kernel
DROPOUT_P = 0.5


def _linear(h, w, b):
    """h (f32) @ w (bf16) + b (f32), accumulating in f32 on the MXU."""
    return jnp.dot(h.astype(jnp.bfloat16), w,
                   preferred_element_type=jnp.float32) + b


def mlp_kernel(x_ref, w1_ref, b1_ref, wmid_ref, bmid_ref, w6_ref, b6_ref,
               *rest, dropout_p, training):
    if training:
        bits_ref, o_ref = rest
        # keep iff bits >= p * 2^32  (unsigned compare -> keep prob = 1 - p)
        threshold = jnp.uint32(min(int(round(dropout_p * 4294967296.0)),
                                   4294967295))
        scale = 1.0 / (1.0 - dropout_p)
    else:
        (o_ref,) = rest

    h = x_ref[...].astype(jnp.float32)

    # fc1 -> relu
    h = jnp.maximum(_linear(h, w1_ref[...], b1_ref[...]), 0.0)

    # fc2..fc5 from the packed slab; dropout only after fc4 (i==2) and fc5 (i==3)
    for i in range(4):
        h = jnp.maximum(_linear(h, wmid_ref[i], bmid_ref[i]), 0.0)
        if training and i >= 2:
            keep = bits_ref[i - 2] >= threshold
            h = jnp.where(keep, h * scale, 0.0)

    # fc6 (no activation / dropout); output padded to OUT_PAD lanes.
    o_ref[...] = _linear(h, w6_ref[...], b6_ref[...]).astype(o_ref.dtype)


def really_small_rectangle_end_dropout(x, params, *, dropout_p=DROPOUT_P,
                                       training=True, rng_key=None):
    """Fused forward pass.

    x:      (B, INPUT_SIZE) float32
    params: dict with w1 (IN,H) bf16, b1 (1,H) f32, w_mid (4,H,H) bf16,
            b_mid (4,1,H) f32, w6 (H,OUT_PAD) bf16, b6 (1,OUT_PAD) f32
    """
    batch = x.shape[0]
    use_dropout = bool(training) and dropout_p > 0.0

    vmem = pl.BlockSpec(memory_space=pltpu.MemorySpace.VMEM)
    operands = [x, params["w1"], params["b1"], params["w_mid"],
                params["b_mid"], params["w6"], params["b6"]]
    in_specs = [vmem] * 7

    if use_dropout:
        if rng_key is None:
            raise ValueError("rng_key is required when training with dropout")
        # One dropout mask per dropout site (after fc4 and fc5).
        bits = jax.random.bits(rng_key, (2, batch, HIDDEN_SIZE), jnp.uint32)
        operands.append(bits)
        in_specs.append(vmem)

    kernel = functools.partial(mlp_kernel, dropout_p=float(dropout_p),
                               training=use_dropout)

    out_padded = pl.pallas_call(
        kernel,
        out_shape=jax.ShapeDtypeStruct((batch, OUT_PAD), jnp.float32),
        in_specs=in_specs,
        out_specs=vmem,
    )(*operands)

    return out_padded[:, :OUTPUT_SIZE]


def init_params(key):
    """Kaiming-uniform-ish init (like nn.Linear defaults), packed + bf16."""
    dims = [(INPUT_SIZE, HIDDEN_SIZE)] + [(HIDDEN_SIZE, HIDDEN_SIZE)] * 4 \
           + [(HIDDEN_SIZE, OUTPUT_SIZE)]
    ws, bs = [], []
    for fan_in, fan_out in dims:
        key, kw, kb = jax.random.split(key, 3)
        bound = 1.0 / float(fan_in) ** 0.5
        ws.append(jax.random.uniform(kw, (fan_in, fan_out), jnp.float32,
                                     -bound, bound))
        bs.append(jax.random.uniform(kb, (1, fan_out), jnp.float32,
                                     -bound, bound))
    w6 = jnp.pad(ws[5], ((0, 0), (0, OUT_PAD - OUTPUT_SIZE)))
    b6 = jnp.pad(bs[5], ((0, 0), (0, OUT_PAD - OUTPUT_SIZE)))
    return {
        "w1": ws[0].astype(jnp.bfloat16),
        "b1": bs[0],
        "w_mid": jnp.stack(ws[1:5]).astype(jnp.bfloat16),   # (4, H, H)
        "b_mid": jnp.stack(bs[1:5]),                         # (4, 1, H)
        "w6": w6.astype(jnp.bfloat16),
        "b6": b6,
    }


def _reference_eval(x, params):
    """Pure-JAX reference of the eval-mode (no dropout) forward, same math."""
    h = x.astype(jnp.float32)
    h = jnp.maximum(_linear(h, params["w1"], params["b1"]), 0.0)
    for i in range(4):
        h = jnp.maximum(_linear(h, params["w_mid"][i], params["b_mid"][i]), 0.0)
    return _linear(h, params["w6"], params["b6"])[:, :OUTPUT_SIZE]


if __name__ == "__main__":
    key = jax.random.PRNGKey(0)
    key, kx, kp, kd = jax.random.split(key, 4)

    x = jax.random.normal(kx, (BATCH, INPUT_SIZE), jnp.float32)
    params = init_params(kp)

    # Training mode (dropout active after fc4 / fc5, like nn.Dropout.train()).
    out_train = really_small_rectangle_end_dropout(
        x, params, dropout_p=DROPOUT_P, training=True, rng_key=kd)
    out_train = jax.block_until_ready(out_train)
    assert out_train.shape == (BATCH, OUTPUT_SIZE), out_train.shape
    assert bool(jnp.all(jnp.isfinite(out_train)))

    # Eval mode (dropout off) vs. a pure-JAX reference of the same math.
    out_eval = really_small_rectangle_end_dropout(x, params, training=False)
    out_eval = jax.block_until_ready(out_eval)
    ref = _reference_eval(x, params)
    assert out_eval.shape == (BATCH, OUTPUT_SIZE)
    assert jnp.allclose(out_eval, ref, rtol=2e-2, atol=2e-2)

    print("KERNEL_OK")
</pallas_src>

<mosaic_0001>
module attributes {stable_mosaic.version = 11 : i64} {
  func.func @mlp_kernel(%arg0: memref<8x256xf32, #tpu.memory_space<vmem>>, %arg1: memref<256x128xbf16, #tpu.memory_space<vmem>>, %arg2: memref<1x128xf32, #tpu.memory_space<vmem>>, %arg3: memref<4x128x128xbf16, #tpu.memory_space<vmem>>, %arg4: memref<4x1x128xf32, #tpu.memory_space<vmem>>, %arg5: memref<128x128xbf16, #tpu.memory_space<vmem>>, %arg6: memref<1x128xf32, #tpu.memory_space<vmem>>, %arg7: memref<2x8x128xi32, #tpu.memory_space<vmem>>, %arg8: memref<8x128xf32, #tpu.memory_space<vmem>>) attributes {dimension_semantics = [], scalar_prefetch = 0 : i64, scratch_operands = 0 : i64, tpu.core_type = #tpu.core_type<tc>} {
    %c0 = arith.constant 0 : index
    %c0_0 = arith.constant 0 : index
    %0 = vector.load %arg0[%c0, %c0_0] : memref<8x256xf32, #tpu.memory_space<vmem>>, vector<8x256xf32>
    %c0_1 = arith.constant 0 : index
    %c0_2 = arith.constant 0 : index
    %1 = vector.load %arg1[%c0_1, %c0_2] : memref<256x128xbf16, #tpu.memory_space<vmem>>, vector<256x128xbf16>
    %c0_3 = arith.constant 0 : index
    %c0_4 = arith.constant 0 : index
    %2 = vector.load %arg2[%c0_3, %c0_4] : memref<1x128xf32, #tpu.memory_space<vmem>>, vector<1x128xf32>
    %3 = arith.truncf %0 : vector<8x256xf32> to vector<8x256xbf16>
    %cst = arith.constant dense<0.000000e+00> : vector<8x128xf32>
    %4 = tpu.matmul %3, %1, %cst {dimension_numbers = #tpu.dot_dimension_numbers<[1], [0], [0], [1], [0, 0, 1, 1], [], []>} : vector<8x256xbf16>, vector<256x128xbf16>, vector<8x128xf32> -> vector<8x128xf32>
    %5 = vector.broadcast %2 : vector<1x128xf32> to vector<8x128xf32>
    %6 = arith.addf %4, %5 : vector<8x128xf32>
    %cst_5 = arith.constant 0.000000e+00 : f32
    %7 = vector.broadcast %cst_5 : f32 to vector<8x128xf32>
    %8 = arith.maximumf %6, %7 : vector<8x128xf32>
    %c0_6 = arith.constant 0 : index
    %c0_7 = arith.constant 0 : index
    %c0_8 = arith.constant 0 : index
    %9 = vector.load %arg3[%c0_6, %c0_7, %c0_8] : memref<4x128x128xbf16, #tpu.memory_space<vmem>>, vector<1x128x128xbf16>
    %10 = vector.shape_cast %9 : vector<1x128x128xbf16> to vector<128x128xbf16>
    %c0_9 = arith.constant 0 : index
    %c0_10 = arith.constant 0 : index
    %c0_11 = arith.constant 0 : index
    %11 = vector.load %arg4[%c0_9, %c0_10, %c0_11] : memref<4x1x128xf32, #tpu.memory_space<vmem>>, vector<1x1x128xf32>
    %12 = vector.shape_cast %11 : vector<1x1x128xf32> to vector<1x128xf32>
    %13 = arith.truncf %8 : vector<8x128xf32> to vector<8x128xbf16>
    %cst_12 = arith.constant dense<0.000000e+00> : vector<8x128xf32>
    %14 = tpu.matmul %13, %10, %cst_12 {dimension_numbers = #tpu.dot_dimension_numbers<[1], [0], [0], [1], [0, 0, 1, 1], [], []>} : vector<8x128xbf16>, vector<128x128xbf16>, vector<8x128xf32> -> vector<8x128xf32>
    %15 = vector.broadcast %12 : vector<1x128xf32> to vector<8x128xf32>
    %16 = arith.addf %14, %15 : vector<8x128xf32>
    %cst_13 = arith.constant 0.000000e+00 : f32
    %17 = vector.broadcast %cst_13 : f32 to vector<8x128xf32>
    %18 = arith.maximumf %16, %17 : vector<8x128xf32>
    %c1 = arith.constant 1 : index
    %c0_14 = arith.constant 0 : index
    %c0_15 = arith.constant 0 : index
    %19 = vector.load %arg3[%c1, %c0_14, %c0_15] : memref<4x128x128xbf16, #tpu.memory_space<vmem>>, vector<1x128x128xbf16>
    %20 = vector.shape_cast %19 : vector<1x128x128xbf16> to vector<128x128xbf16>
    %c1_16 = arith.constant 1 : index
    %c0_17 = arith.constant 0 : index
    %c0_18 = arith.constant 0 : index
    %21 = vector.load %arg4[%c1_16, %c0_17, %c0_18] : memref<4x1x128xf32, #tpu.memory_space<vmem>>, vector<1x1x128xf32>
    %22 = vector.shape_cast %21 : vector<1x1x128xf32> to vector<1x128xf32>
    %23 = arith.truncf %18 : vector<8x128xf32> to vector<8x128xbf16>
    %cst_19 = arith.constant dense<0.000000e+00> : vector<8x128xf32>
    %24 = tpu.matmul %23, %20, %cst_19 {dimension_numbers = #tpu.dot_dimension_numbers<[1], [0], [0], [1], [0, 0, 1, 1], [], []>} : vector<8x128xbf16>, vector<128x128xbf16>, vector<8x128xf32> -> vector<8x128xf32>
    %25 = vector.broadcast %22 : vector<1x128xf32> to vector<8x128xf32>
    %26 = arith.addf %24, %25 : vector<8x128xf32>
    %cst_20 = arith.constant 0.000000e+00 : f32
    %27 = vector.broadcast %cst_20 : f32 to vector<8x128xf32>
    %28 = arith.maximumf %26, %27 : vector<8x128xf32>
    %c2 = arith.constant 2 : index
    %c0_21 = arith.constant 0 : index
    %c0_22 = arith.constant 0 : index
    %29 = vector.load %arg3[%c2, %c0_21, %c0_22] : memref<4x128x128xbf16, #tpu.memory_space<vmem>>, vector<1x128x128xbf16>
    %30 = vector.shape_cast %29 : vector<1x128x128xbf16> to vector<128x128xbf16>
    %c2_23 = arith.constant 2 : index
    %c0_24 = arith.constant 0 : index
    %c0_25 = arith.constant 0 : index
    %31 = vector.load %arg4[%c2_23, %c0_24, %c0_25] : memref<4x1x128xf32, #tpu.memory_space<vmem>>, vector<1x1x128xf32>
    %32 = vector.shape_cast %31 : vector<1x1x128xf32> to vector<1x128xf32>
    %33 = arith.truncf %28 : vector<8x128xf32> to vector<8x128xbf16>
    %cst_26 = arith.constant dense<0.000000e+00> : vector<8x128xf32>
    %34 = tpu.matmul %33, %30, %cst_26 {dimension_numbers = #tpu.dot_dimension_numbers<[1], [0], [0], [1], [0, 0, 1, 1], [], []>} : vector<8x128xbf16>, vector<128x128xbf16>, vector<8x128xf32> -> vector<8x128xf32>
    %35 = vector.broadcast %32 : vector<1x128xf32> to vector<8x128xf32>
    %36 = arith.addf %34, %35 : vector<8x128xf32>
    %cst_27 = arith.constant 0.000000e+00 : f32
    %37 = vector.broadcast %cst_27 : f32 to vector<8x128xf32>
    %38 = arith.maximumf %36, %37 : vector<8x128xf32>
    %c0_28 = arith.constant 0 : index
    %c0_29 = arith.constant 0 : index
    %c0_30 = arith.constant 0 : index
    %39 = vector.load %arg7[%c0_28, %c0_29, %c0_30] : memref<2x8x128xi32, #tpu.memory_space<vmem>>, vector<1x8x128xi32>
    %40 = vector.shape_cast %39 : vector<1x8x128xi32> to vector<8x128xi32>
    %c-2147483648_i32 = arith.constant -2147483648 : i32
    %41 = vector.broadcast %c-2147483648_i32 : i32 to vector<8x128xi32>
    %42 = arith.cmpi uge, %40, %41 : vector<8x128xi32>
    %cst_31 = arith.constant 2.000000e+00 : f32
    %43 = vector.broadcast %cst_31 : f32 to vector<8x128xf32>
    %44 = arith.mulf %38, %43 : vector<8x128xf32>
    %cst_32 = arith.constant 0.000000e+00 : f32
    %45 = vector.broadcast %cst_32 : f32 to vector<8x128xf32>
    %46 = arith.select %42, %44, %45 : vector<8x128xi1>, vector<8x128xf32>
    %c3 = arith.constant 3 : index
    %c0_33 = arith.constant 0 : index
    %c0_34 = arith.constant 0 : index
    %47 = vector.load %arg3[%c3, %c0_33, %c0_34] : memref<4x128x128xbf16, #tpu.memory_space<vmem>>, vector<1x128x128xbf16>
    %48 = vector.shape_cast %47 : vector<1x128x128xbf16> to vector<128x128xbf16>
    %c3_35 = arith.constant 3 : index
    %c0_36 = arith.constant 0 : index
    %c0_37 = arith.constant 0 : index
    %49 = vector.load %arg4[%c3_35, %c0_36, %c0_37] : memref<4x1x128xf32, #tpu.memory_space<vmem>>, vector<1x1x128xf32>
    %50 = vector.shape_cast %49 : vector<1x1x128xf32> to vector<1x128xf32>
    %51 = arith.truncf %46 : vector<8x128xf32> to vector<8x128xbf16>
    %cst_38 = arith.constant dense<0.000000e+00> : vector<8x128xf32>
    %52 = tpu.matmul %51, %48, %cst_38 {dimension_numbers = #tpu.dot_dimension_numbers<[1], [0], [0], [1], [0, 0, 1, 1], [], []>} : vector<8x128xbf16>, vector<128x128xbf16>, vector<8x128xf32> -> vector<8x128xf32>
    %53 = vector.broadcast %50 : vector<1x128xf32> to vector<8x128xf32>
    %54 = arith.addf %52, %53 : vector<8x128xf32>
    %cst_39 = arith.constant 0.000000e+00 : f32
    %55 = vector.broadcast %cst_39 : f32 to vector<8x128xf32>
    %56 = arith.maximumf %54, %55 : vector<8x128xf32>
    %c1_40 = arith.constant 1 : index
    %c0_41 = arith.constant 0 : index
    %c0_42 = arith.constant 0 : index
    %57 = vector.load %arg7[%c1_40, %c0_41, %c0_42] : memref<2x8x128xi32, #tpu.memory_space<vmem>>, vector<1x8x128xi32>
    %58 = vector.shape_cast %57 : vector<1x8x128xi32> to vector<8x128xi32>
    %c-2147483648_i32_43 = arith.constant -2147483648 : i32
    %59 = vector.broadcast %c-2147483648_i32_43 : i32 to vector<8x128xi32>
    %60 = arith.cmpi uge, %58, %59 : vector<8x128xi32>
    %cst_44 = arith.constant 2.000000e+00 : f32
    %61 = vector.broadcast %cst_44 : f32 to vector<8x128xf32>
    %62 = arith.mulf %56, %61 : vector<8x128xf32>
    %cst_45 = arith.constant 0.000000e+00 : f32
    %63 = vector.broadcast %cst_45 : f32 to vector<8x128xf32>
    %64 = arith.select %60, %62, %63 : vector<8x128xi1>, vector<8x128xf32>
    %c0_46 = arith.constant 0 : index
    %c0_47 = arith.constant 0 : index
    %65 = vector.load %arg5[%c0_46, %c0_47] : memref<128x128xbf16, #tpu.memory_space<vmem>>, vector<128x128xbf16>
    %c0_48 = arith.constant 0 : index
    %c0_49 = arith.constant 0 : index
    %66 = vector.load %arg6[%c0_48, %c0_49] : memref<1x128xf32, #tpu.memory_space<vmem>>, vector<1x128xf32>
    %67 = arith.truncf %64 : vector<8x128xf32> to vector<8x128xbf16>
    %cst_50 = arith.constant dense<0.000000e+00> : vector<8x128xf32>
    %68 = tpu.matmul %67, %65, %cst_50 {dimension_numbers = #tpu.dot_dimension_numbers<[1], [0], [0], [1], [0, 0, 1, 1], [], []>} : vector<8x128xbf16>, vector<128x128xbf16>, vector<8x128xf32> -> vector<8x128xf32>
    %69 = vector.broadcast %66 : vector<1x128xf32> to vector<8x128xf32>
    %70 = arith.addf %68, %69 : vector<8x128xf32>
    %c0_51 = arith.constant 0 : index
    %c0_52 = arith.constant 0 : index
    %71 = vector.load %arg8[%c0_51, %c0_52] : memref<8x128xf32, #tpu.memory_space<vmem>>, vector<8x128xf32>
    tpu.vector_store %arg8[%c0_51, %c0_52], %70 {strides = array<i32>} : memref<8x128xf32, #tpu.memory_space<vmem>>, vector<8x128xf32>,
    return
  }
}

</mosaic_0001>

<bundles_post_ra>
// kernel: tpu_custom_call.1
= control target key start
LH: loop header
LB: loop body
LE: loop exit
PB: predicated region body
PF: predicated region fallthrough
CT: control target
= control target key end

     0   :  { %13 = vsyncpa [#allocation3], 0  ;;  %s1318_s0 = inlined_call_operand.hbm [shape: f32[8,256], index: 0, kind: input, shape index: {}]   ;;  %s1319_s1 = inlined_call_operand.hbm [shape: bf16[256,128], index: 1, kind: input, shape index: {}]   ;;  %s1320_s2 = inlined_call_operand.vmem [shape: f32[1,128], index: 2, kind: input, shape index: {}]   ;;  %s1321_s3 = inlined_call_operand.hbm [shape: bf16[4,128,128], index: 3, kind: input, shape index: {}]   ;;  %s1322_s4 = inlined_call_operand.hbm [shape: f32[4,1,128], index: 4, kind: input, shape index: {}]   ;;  %s1323_s5 = inlined_call_operand.hbm [shape: bf16[128,128], index: 5, kind: input, shape index: {}]   ;;  %s1324_s6 = inlined_call_operand.vmem [shape: f32[1,128], index: 6, kind: input, shape index: {}]   ;;  %s1325_s7 = inlined_call_operand.hbm [shape: u32[2,8,128], index: 7, kind: input, shape index: {}]   ;;  %s1326_s8 = inlined_call_operand.hbm [shape: f32[8,128], index: 8, kind: output, shape index: {}]  }
   0x1   :  { %14 = vsyncpa [#allocation6], 0 }
   0x2   :  { %15 = vsyncpa [#allocation9], 0 }
   0x3   :  { %16 = vsyncpa [#allocation12], 0  ;;  %s33_s29 = sshll.u32 %s1319_s1, 4  ;;  %s34_s29 = int_to_ptr.hbm [resolvable:$true] %s33_s29 }
   0x4   :  { %17 = vsyncpa [#allocation4], 0  ;;  %s1224_s30 = smov [#allocation5]   ;;  %s61_s12 = sshll.u32 %s1322_s4, 4  ;;  %s62_s12 = int_to_ptr.hbm [resolvable:$true] %s61_s12 }
   0x5   :  { %s35_s9 = sshll.u32 %s1224_s30, 4  ;;  %s1225_s13 = smov 64   ;;  %s36_s9 = int_to_ptr.vmem [resolvable:$true] %s35_s9 }
   0x6   :  { %s1226_s14 = smov 4   ;;  %s1227_s15 = smov [#allocation8]  }
   0x7   :  { %41 = dma.hbm_to_vmem [thread:$0]  %s34_s29, 2048, %s36_s9, [#allocation6], %s1225_s13, %s1225_s13, %s1226_s14  }
   0x8   :  { %s63_s16 = sshll.u32 %s1227_s15, 4  ;;  %s1228_s1 = smov 16   ;;  %s64_s16 = int_to_ptr.vmem [resolvable:$true] %s63_s16 }
   0x9   :  { %s1229_s17 = smov 1   ;;  %s23_s20 = sshll.u32 %s1318_s0, 4  ;;  %s24_s20 = int_to_ptr.hbm [resolvable:$true] %s23_s20 }
   0xa   :  { %69 = dma.hbm_to_vmem [thread:$0]  %s62_s12, 64, %s64_s16, [#allocation9], %s1228_s1, %s1228_s1, %s1229_s17  }
   0xb   :  { %s1230_s21 = smov [#allocation2]   ;;  %s48_s24 = sshll.u32 %s1321_s3, 4  ;;  %s49_s24 = int_to_ptr.hbm [resolvable:$true] %s48_s24 }
   0xc   :  { %s25_s4 = sshll.u32 %s1230_s21, 4  ;;  %s1231_s25 = smov [#allocation7]   ;;  %s26_s4 = int_to_ptr.vmem [resolvable:$true] %s25_s4 }
   0xd   :  { %28 = dma.hbm_to_vmem [thread:$0]  %s24_s20, 256, %s26_s4, [#allocation3]  }
   0xe   :  { %s50_s26 = sshll.u32 %s1231_s25, 4  ;;  %s74_s29 = sshll.u32 %s1323_s5, 4  ;;  %s51_s26 = int_to_ptr.vmem [resolvable:$true] %s50_s26  ;;  %s75_s29 = int_to_ptr.hbm [resolvable:$true] %s74_s29 }
   0xf   :  { %56 = dma.hbm_to_vmem [thread:$0]  %s49_s24, 4096, %s51_s26, [#allocation6], %s1225_s13, %s1225_s13, %s1226_s14  }
  0x10   :  { %s89_s9 = sshll.u32 %s1325_s7, 4  ;;  %s1232_s10 = smov [#allocation10]   ;;  %s90_s9 = int_to_ptr.hbm [resolvable:$true] %s89_s9 }
  0x11   :  { %s76_s3 = sshll.u32 %s1232_s10, 4  ;;  %s1233_s11 = smov [#allocation11]   ;;  %s77_s3 = int_to_ptr.vmem [resolvable:$true] %s76_s3 }
  0x12   :  { %82 = dma.hbm_to_vmem [thread:$0]  %s75_s29, 1024, %s77_s3, [#allocation9], %s1225_s13, %s1225_s13, %s1226_s14  }
  0x13   :  { %s91_s5 = sshll.u32 %s1233_s11, 4  ;;  %s1234_s12 = smov 128   ;;  %s92_s5 = int_to_ptr.vmem [resolvable:$true] %s91_s5 }
  0x14   :  { %s1235_s15 = smov 8  }
  0x15   :  { %97 = dma.hbm_to_vmem [thread:$0]  %s90_s9, 256, %s92_s5, [#allocation12], %s1234_s12, %s1234_s12, %s1235_s15  }
  0x16   :  { %1214 = dma.done.wait [#allocation3], 256  }
  0x17   :  { %1215 = vsyncadd [#allocation3], 4294967040 }
  0x18   :  { %1216 = dma.done.wait [#allocation6], 6144  }
  0x19   :  { %1217 = vsyncadd [#allocation6], 4294961152 }
  0x1a   :  { %1218 = dma.done.wait [#allocation9], 1088  }
  0x1b   :  { %1219 = vsyncadd [#allocation9], 4294966208 }
  0x1c   :  { %1220 = dma.done.wait [#allocation12], 256  }
  0x1d   :  { %1221 = vsyncadd [#allocation12], 4294967040  ;;  %v978_v0 = vld [vmem:[#allocation5 + $0x38] sm:$0xff]  ;;  %v977_v2 = vld [vmem:[#allocation5 + $0x30] sm:$0xff]  ;;  %s1236_s16 = smov [#allocation13]   ;;  %s726_s19 = sshll.u32 %s1326_s8, 4  ;;  %s727_s19 = int_to_ptr.hbm [resolvable:$true] %s726_s19 }
  0x1e   :  { %v986_v1 = vld [vmem:[#allocation5 + $0x78] sm:$0xff]  ;;  %258 = vmatpush.bf16.msra.mxu0 %v978_v0  ;;  %v985_v3 = vld [vmem:[#allocation5 + $0x70] sm:$0xff]  ;;  %v976_v4 = vld [vmem:[#allocation5 + $0x28] sm:$0xff]  ;;  %s724_s1 = sshll.u32 %s1236_s16, 4  ;;  %s725_s1 = int_to_ptr.vmem [resolvable:$true] %s724_s1 }
  0x1f   :  { %271 = vmatpush.bf16.msra.mxu1 %v986_v1  ;;  %v984_v5 = vld [vmem:[#allocation5 + $0x68] sm:$0xff]  ;;  %v994_v6 = vld [vmem:[#allocation7 + $0x38] sm:$0xff]  ;;  %v993_v7 = vld [vmem:[#allocation7 + $0x30] sm:$0xff] }
  0x20   :  { %354 = vmatpush.bf16.msra.mxu2 %v994_v6  ;;  %v975_v8 = vld [vmem:[#allocation5 + $0x20] sm:$0xff]  ;;  %v992_v10 = vld [vmem:[#allocation7 + $0x28] sm:$0xff]  ;;  %v974_v11 = vld [vmem:[#allocation5 + $0x18] sm:$0xff] }
  0x21   :  { %v983_v9 = vld [vmem:[#allocation5 + $0x60] sm:$0xff]  ;;  %v982_v12 = vld [vmem:[#allocation5 + $0x58] sm:$0xff]  ;;  %v973_v14 = vld [vmem:[#allocation5 + $0x10] sm:$0xff] }
  0x22   :  { %259 = vmatpush.bf16.msra.mxu0 %v977_v2  ;;  %v991_v13 = vld [vmem:[#allocation7 + $0x20] sm:$0xff]  ;;  %v981_v15 = vld [vmem:[#allocation5 + $0x50] sm:$0xff]  ;;  %v990_v16 = vld [vmem:[#allocation7 + $0x18] sm:$0xff] }
  0x23   :  { %272 = vmatpush.bf16.msra.mxu1 %v985_v3  ;;  %v972_v17 = vld [vmem:[#allocation5 + $0x8] sm:$0xff]  ;;  %v989_v19 = vld [vmem:[#allocation7 + $0x10] sm:$0xff]  ;;  %v971_v20 = vld [vmem:[#allocation5] sm:$0xff] }
  0x24   :  { %355 = vmatpush.bf16.msra.mxu2 %v993_v7  ;;  %v980_v18 = vld [vmem:[#allocation5 + $0x48] sm:$0xff]  ;;  %v979_v21 = vld [vmem:[#allocation5 + $0x40] sm:$0xff]  ;;  %v122_v22 = vld [vmem:[#allocation2] sm:$0xff] }
  0x25   :  { %v123_v23 = vld [vmem:[#allocation2 + $0x8] sm:$0xff]  ;;  %v157_v24 = vpack.c.bf16 %v122_v22, %v122_v22  ;;  %v988_v26 = vld [vmem:[#allocation7 + $0x8] sm:$0xff]  ;;  %v987_v27 = vld [vmem:[#allocation7] sm:$0xff] }
  0x26   :  { %260 = vmatpush.bf16.msra.mxu0 %v976_v4  ;;  %v158_v25 = vpack.c.bf16 %v123_v23, %v123_v23  ;;  %v1002_v28 = vld [vmem:[#allocation7 + $0x78] sm:$0xff]  ;;  %v1001_v29 = vld [vmem:[#allocation7 + $0x70] sm:$0xff]  ;;  %v1000_v30 = vld [vmem:[#allocation7 + $0x68] sm:$0xff] }
  0x27   :  { %273 = vmatpush.bf16.msra.mxu1 %v984_v5  ;;  %439 = vmatpush.bf16.msra.mxu3 %v1002_v28  ;;  %v999_v31 = vld [vmem:[#allocation7 + $0x60] sm:$0xff]  ;;  %v998_v32 = vld [vmem:[#allocation7 + $0x58] sm:$0xff]  ;;  %v997_v33 = vld [vmem:[#allocation7 + $0x50] sm:$0xff] }
  0x28   :  { %356 = vmatpush.bf16.msra.mxu2 %v992_v10  ;;  %v1040_v34 = vld [vmem:[%s1320_s2] ss:$0 sm:$0xff]  ;;  %v996_v43 = vld [vmem:[#allocation7 + $0x48] sm:$0xff]  ;;  %v995_v44 = vld [vmem:[#allocation7 + $0x40] sm:$0xff] }
  0x29   :  { %v1010_v45 = vld [vmem:[#allocation7 + $0xb8] sm:$0xff]  ;;  %v1009_v46 = vld [vmem:[#allocation7 + $0xb0] sm:$0xff]  ;;  %v1008_v47 = vld [vmem:[#allocation7 + $0xa8] sm:$0xff] }
  0x2a   :  { %261 = vmatpush.bf16.msra.mxu0 %v975_v8  ;;  %v1007_v48 = vld [vmem:[#allocation7 + $0xa0] sm:$0xff]  ;;  %v1006_v49 = vld [vmem:[#allocation7 + $0x98] sm:$0xff]  ;;  %v1005_v50 = vld [vmem:[#allocation7 + $0x90] sm:$0xff] }
  0x2b   :  { %274 = vmatpush.bf16.msra.mxu1 %v983_v9  ;;  %440 = vmatpush.bf16.msra.mxu3 %v1001_v29  ;;  %v1041_v51 = vld [vmem:[#allocation8] ss:$0 sm:$0xff]  ;;  %v1004_v57 = vld [vmem:[#allocation7 + $0x88] sm:$0xff]  ;;  %v1018_v59 = vld [vmem:[#allocation7 + $0xf8] sm:$0xff] }
  0x2c   :  { %357 = vmatpush.bf16.msra.mxu2 %v991_v13  ;;  %v1003_v58 = vld [vmem:[#allocation7 + $0x80] sm:$0xff]  ;;  %v1017_v60 = vld [vmem:[#allocation7 + $0xf0] sm:$0xff]  ;;  %v1016_v61 = vld [vmem:[#allocation7 + $0xe8] sm:$0xff] }
  0x2d   :  { %v1015_v62 = vld [vmem:[#allocation7 + $0xe0] sm:$0xff]  ;;  %v1014_v63 = vld [vmem:[#allocation7 + $0xd8] sm:$0xff]  ;;  %v1013_v0 = vld [vmem:[#allocation7 + $0xd0] sm:$0xff] }
  0x2e   :  { %262 = vmatpush.bf16.msra.mxu0 %v974_v11  ;;  %v1042_v1 = vld [vmem:[#allocation8 + $0x1] ss:$0 sm:$0xff]  ;;  %v1012_v7 = vld [vmem:[#allocation7 + $0xc8] sm:$0xff]  ;;  %v1025_v10 = vld [vmem:[#allocation10 + $0x30] sm:$0xff] }
  0x2f   :  { %275 = vmatpush.bf16.msra.mxu1 %v982_v12  ;;  %441 = vmatpush.bf16.msra.mxu3 %v1000_v30  ;;  %v1011_v8 = vld [vmem:[#allocation7 + $0xc0] sm:$0xff]  ;;  %v1024_v11 = vld [vmem:[#allocation10 + $0x28] sm:$0xff] }
  0x30   :  { %358 = vmatpush.bf16.msra.mxu2 %v990_v16  ;;  %v1026_v9 = vld [vmem:[#allocation10 + $0x38] sm:$0xff]  ;;  %v1023_v12 = vld [vmem:[#allocation10 + $0x20] sm:$0xff] }
  0x31   :  { %v1022_v13 = vld [vmem:[#allocation10 + $0x18] sm:$0xff] }
  0x32   :  { %263 = vmatpush.bf16.msra.mxu0 %v973_v14  ;;  %v1021_v14 = vld [vmem:[#allocation10 + $0x10] sm:$0xff]  ;;  %v1043_v16 = vld [vmem:[#allocation8 + $0x2] ss:$0 sm:$0xff] }
  0x33   :  { %276 = vmatpush.bf16.msra.mxu1 %v981_v15  ;;  %442 = vmatpush.bf16.msra.mxu3 %v999_v31  ;;  %v538_v15 = vld [vmem:[#allocation11] sm:$0xff] }
  0x34   :  { %359 = vmatpush.bf16.msra.mxu2 %v989_v19 }
  0x36   :  { %264 = vmatpush.bf16.msra.mxu0 %v972_v17  ;;  %v899_v17 = vxor.u32 2147483648, %v538_v15 }
  0x37   :  { %277 = vmatpush.bf16.msra.mxu1 %v980_v18  ;;  %443 = vmatpush.bf16.msra.mxu3 %v998_v32 }
  0x38   :  { %360 = vmatpush.bf16.msra.mxu2 %v988_v26  ;;  %vm541_vm0 = vcmp.ge.s32.totalorder %v899_v17, 0  ;;  %v630_v26 = vld [vmem:[#allocation11 + $0x8] sm:$0xff] }
  0x39   :  { %vm932_vm1 = vmpackc.low %vm541_vm0, %vm541_vm0  ;;  %v935_v28 = vxor.u32 2147483648, %v630_v26 }
  0x3a   :  { %265 = vmatpush.bf16.msra.mxu0 %v971_v20 }
  0x3b   :  { %278 = vmatpush.bf16.msra.mxu1 %v979_v21  ;;  %444 = vmatpush.bf16.msra.mxu3 %v997_v33  ;;  %vm633_vm2 = vcmp.ge.s32.totalorder %v935_v28, 0 }
  0x3c   :  { %361 = vmatpush.bf16.msra.mxu2 %v987_v27  ;;  %v1044_v27 = vld [vmem:[#allocation8 + $0x3] ss:$0 sm:$0xff]  ;;  %vm968_vm3 = vmpackc.low %vm633_vm2, %vm633_vm2 }
  0x3d   :  { %266 = vmatmul.bf16.vlgmr.msra.gmra.mxu0 %v157_v24  ;;  %v1020_v24 = vld [vmem:[#allocation10 + $0x8] sm:$0xff] }
  0x3e   :  { %279 = vmatmul.bf16.vlgmr.msra.gmra.mxu1 %v158_v25  ;;  %524 = vmatpush.bf16.msrb.mxu0 %v1010_v45  ;;  %v1019_v25 = vld [vmem:[#allocation10] sm:$0xff] }
  0x3f   :  { %445 = vmatpush.bf16.msra.mxu3 %v996_v43  ;;  %615 = vmatpush.bf16.msrb.mxu1 %v1018_v59 }
  0x40   :  { %705 = vmatpush.bf16.msrb.mxu2 %v1026_v9 }
  0x42   :  { %525 = vmatpush.bf16.msrb.mxu0 %v1009_v46 }
  0x43   :  { %446 = vmatpush.bf16.msra.mxu3 %v995_v44  ;;  %616 = vmatpush.bf16.msrb.mxu1 %v1017_v60 }
  0x44   :  { %706 = vmatpush.bf16.msrb.mxu2 %v1025_v10 }
  0x46   :  { %526 = vmatpush.bf16.msrb.mxu0 %v1008_v47 }
  0x47   :  { %617 = vmatpush.bf16.msrb.mxu1 %v1016_v61 }
  0x48   :  { %707 = vmatpush.bf16.msrb.mxu2 %v1024_v11 }
  0x4a   :  { %527 = vmatpush.bf16.msrb.mxu0 %v1007_v48 }
  0x4b   :  { %618 = vmatpush.bf16.msrb.mxu1 %v1015_v62 }
  0x4c   :  { %708 = vmatpush.bf16.msrb.mxu2 %v1023_v12 }
  0x4e   :  { %528 = vmatpush.bf16.msrb.mxu0 %v1006_v49 }
  0x4f   :  { %619 = vmatpush.bf16.msrb.mxu1 %v1014_v63 }
  0x50   :  { %709 = vmatpush.bf16.msrb.mxu2 %v1022_v13 }
  0x52   :  { %529 = vmatpush.bf16.msrb.mxu0 %v1005_v50 }
  0x53   :  { %620 = vmatpush.bf16.msrb.mxu1 %v1013_v0 }
  0x54   :  { %710 = vmatpush.bf16.msrb.mxu2 %v1021_v14 }
  0x56   :  { %530 = vmatpush.bf16.msrb.mxu0 %v1004_v57 }
  0x57   :  { %621 = vmatpush.bf16.msrb.mxu1 %v1012_v7 }
  0x58   :  { %711 = vmatpush.bf16.msrb.mxu2 %v1020_v24 }
  0x5a   :  { %531 = vmatpush.bf16.msrb.mxu0 %v1003_v58 }
  0x5b   :  { %622 = vmatpush.bf16.msrb.mxu1 %v1011_v8 }
  0x5c   :  { %712 = vmatpush.bf16.msrb.mxu2 %v1019_v25 }
  0xba   :  { %v267_v35 = vpop.f32.mrf.mxu0 }
  0xbb   :  { %v280_v36 = vpop.f32.mrf.mxu1  ;;  %v268_v37 = vadd.f32 %v1040_v34, %v267_v35  ;;  %v1045_v35 = vld [vmem:[%s1324_s6] ss:$0 sm:$0xff] }
  0xbd   :  { %v281_v38 = vadd.f32 %v280_v36, %v268_v37 }
  0xbf   :  { %v284_v39 = vmax.f32 %v281_v38, 0.0 }
  0xc1   :  { %v302_v40 = vpack.c.bf16 %v284_v39, %v284_v39 }
  0xc2   :  { %v269_v41 = vpop.f32.mrf.mxu0 }
  0xc3   :  { %v282_v42 = vpop.f32.mrf.mxu1  ;;  %362 = vmatmul.bf16.vlgmr.msra.gmra.mxu2 %v302_v40 }
 0x146   :  { %v363_v52 = vpop.f32.mrf.mxu2 }
 0x147   :  { %v364_v53 = vadd.f32 %v1041_v51, %v363_v52 }
 0x149   :  { %v367_v54 = vmax.f32 %v364_v53, 0.0 }
 0x14b   :  { %v387_v55 = vpack.c.bf16 %v367_v54, %v367_v54 }
 0x14d   :  { %447 = vmatmul.bf16.vlgmr.msra.gmra.mxu3 %v387_v55 }
 0x14e   :  { %v365_v56 = vpop.f32.mrf.mxu2 }
 0x1d0   :  { %v448_v2 = vpop.f32.mrf.mxu3 }
 0x1d1   :  { %v449_v3 = vadd.f32 %v1042_v1, %v448_v2 }
 0x1d3   :  { %v452_v4 = vmax.f32 %v449_v3, 0.0 }
 0x1d5   :  { %v472_v5 = vpack.c.bf16 %v452_v4, %v452_v4 }
 0x1d7   :  { %532 = vmatmul.bf16.vlgmr.msrb.gmra.mxu0 %v472_v5 }
 0x1d8   :  { %v450_v6 = vpop.f32.mrf.mxu3 }
 0x254   :  { %v533_v18 = vpop.f32.mrf.mxu0 }
 0x255   :  { %v534_v19 = vadd.f32 %v1043_v16, %v533_v18 }
 0x257   :  { %v537_v20 = vmax.f32 %v534_v19, 0.0 }
 0x259   :  { %v542_v21 = vmul.f32 2.0, %v537_v20 }
 0x25b   :  { %v933_v22 = vpack.c.bf16 %v542_v21, %v542_v21 }
 0x25c   :  { %v535_v23 = vpop.f32.mrf.mxu0 }
 0x25d   :  { %934 = vmatmul.msk.bf16.vlgmr.msrb.gmra.mxu1 %vm932_vm1, %v933_v22 }
 0x2da   :  { %v624_v29 = vpop.f32.mrf.mxu1 }
 0x2db   :  { %v625_v30 = vadd.f32 %v1044_v27, %v624_v29 }
 0x2dd   :  { %v628_v31 = vmax.f32 %v625_v30, 0.0 }
 0x2df   :  { %v634_v32 = vmul.f32 2.0, %v628_v31 }
 0x2e1   :  { %v969_v33 = vpack.c.bf16 %v634_v32, %v634_v32 }
 0x2e2   :  { %v626_v34 = vpop.f32.mrf.mxu1 }
 0x2e3   :  { %970 = vmatmul.msk.bf16.vlgmr.msrb.gmra.mxu2 %vm968_vm3, %v969_v33 }
 0x366   :  { %v714_v36 = vpop.f32.mrf.mxu2 }
 0x367   :  { %v715_v37 = vadd.f32 %v1045_v35, %v714_v36 }
 0x369   :  { %718 = vst [vmem:[#allocation13] sm:$0xff] %v715_v37 }
 0x36a   :  { %729 = dma.vmem_to_hbm [thread:$0]  %s725_s1, 128, %s727_s19, [#allocation4]  }
 0x36e   :  { %v716_v38 = vpop.f32.mrf.mxu2 }
 0x36f   :  { %1222 = dma.done.wait [#allocation4], 128  }
 0x370   :  { %1223 = vsyncadd [#allocation4], 4294967168 }
 0x371   :  { %734 = vsyncpa [#allocation3], 1 }
 0x372   :  { %735 = vsyncpa [#allocation6], 1 }
 0x373   :  { %736 = vsyncpa [#allocation9], 1 }
 0x374   :  { %737 = vsyncpa [#allocation12], 1 }
 0x375   :  { %738 = vsyncpa [#allocation4], 1 }

</bundles_post_ra>
